<compile_context>
chip_gen: v5e
topology: v5e:2x2
jax: 0.10.0
libtpu: 0.0.40
codegen_flags: <defaults>
</compile_context>

<pallas_src>
import functools

import jax
import jax.numpy as jnp
from jax.experimental import pallas as pl
from jax.experimental.pallas import tpu as pltpu


# ----------------------------------------------------------------------------
# Pallas kernel
# ----------------------------------------------------------------------------
def _uninorm_kernel(x_ref, n_ref, o_ref, xt_ref, *, tnorm, off_diagonal):
    # x_ref : (TB, N)  batch tile in native (batch, columns) layout
    # n_ref : (1, TB)  per-row neutral, batch on lanes
    # o_ref : (1, TB)  aggregated output, batch on lanes
    # xt_ref: (N, TB)  VMEM scratch: transposed tile / in-place tree levels
    n_cols = x_ref.shape[1]

    neutral = n_ref[...]                       # (1, TB)
    one_minus = 1.0 - neutral
    if tnorm == "product":
        # Hoisted, loop-invariant per-lane reciprocals: the per-pair hot path
        # only multiplies.  (The lukasiewicz path needs neither -- see
        # combine(); it is division-free after algebraic fusion.)
        inv_n = 1.0 / neutral
        inv_om = 1.0 / one_minus

    # Single XLU pass: batch -> lanes (128-wide), columns -> sublanes.
    xt_ref[...] = jnp.transpose(x_ref[...])

    def offdiag_fn(a, b):
        if off_diagonal == "min":
            return jnp.minimum(a, b)
        if off_diagonal == "mean":
            return (a + b) * 0.5
        if off_diagonal == "max":
            return jnp.maximum(a, b)
        raise ValueError("Unknown off-diagonal aggregator: " + off_diagonal)

    def combine(a, b):
        # a, b: (m, TB); neutral-derived (1, TB) rows broadcast over sublanes.
        m00 = jnp.logical_and(a <= neutral, b <= neutral)
        m11 = jnp.logical_and(a >= neutral, b >= neutral)
        if tnorm == "lukasiewicz":
            # Fused form shares s = a + b - n between both diagonal regions.
            s = (a + b) - neutral
            v00 = jnp.maximum(s, 0.0)
            v11 = jnp.minimum(s, 1.0)
        elif tnorm == "product":
            v00 = (a * b) * inv_n
            v11 = ((a + b) - neutral) - ((a - neutral) * (b - neutral)) * inv_om
        else:
            raise ValueError("Unknown tnorm: " + tnorm)
        vxx = offdiag_fn(a, b)
        # Mixed region is exactly ~(m00 | m11) for real inputs; writing m11
        # last matches the PyTorch in-place mask order (m11 wins at a==b==n).
        # TODO(synk): NaN inputs select vxx here vs. 0 in the PyTorch code.
        y = jnp.where(m00, v00, vxx)
        y = jnp.where(m11, v11, y)
        return y

    def reduce_pow2(lo, n):
        # Level-wise balanced-tree reduction of scratch rows [lo, lo+n), n=2^k.
        # Tree shape is identical to the PyTorch half/half recursion.
        y = None
        m = n
        while m > 1:
            half = m // 2
            if half == 1:
                a = xt_ref[pl.ds(lo, 1), :]                 # final level: plain
                b = xt_ref[pl.ds(lo + 1, 1), :]             # unstrided row reads
            else:
                a = xt_ref[pl.ds(lo, half, stride=2), :]     # even rows
                b = xt_ref[pl.ds(lo + 1, half, stride=2), :] # odd rows
            y = combine(a, b)                               # (half, TB)
            if half > 1:
                xt_ref[pl.ds(lo, half), :] = y              # compact in place
            m = half
        return y                                            # (1, TB)

    def reduce_seg(lo, n):
        # Mirrors the PyTorch recursion (split at n // 2) so non-power-of-two
        # column counts keep exactly the same tree shape / numerics.
        if n == 1:
            return xt_ref[pl.ds(lo, 1), :]
        if n & (n - 1) == 0:
            return reduce_pow2(lo, n)
        half = n // 2
        left = reduce_seg(lo, half)
        right = reduce_seg(lo + half, n - half)
        return combine(left, right)

    o_ref[...] = reduce_seg(0, n_cols)


# ----------------------------------------------------------------------------
# Wrapper
# ----------------------------------------------------------------------------
def _choose_batch_tile(batch, n_cols):
    """Batch (lane) tile: full batch if small, else a multiple of 128 sized so
    double-buffered (TB, N) input tiles + the (N, TB) scratch stay well within
    the scoped-VMEM default (also fits v7x's smaller 64 MiB VMEM)."""
    if batch <= 256:
        return batch
    bytes_per_lane = 4 * (3 * n_cols + 4)          # 2x dbl-buffered in + scratch + io
    tb = (6 * 1024 * 1024) // max(bytes_per_lane, 1)
    tb = max(128, min(1024, (tb // 128) * 128))
    return min(tb, batch)


def uninorm_aggregator_forward(
    x,
    neutral,
    *,
    tnorm="lukasiewicz",
    off_diagonal="min",
    normalize_neutral=False,
):
    """Forward pass of UninormAggregator (fc = identity, its default)."""
    x = x.astype(jnp.float32)
    neutral = neutral.astype(jnp.float32)
    B, N = x.shape
    assert N >= 1
    assert neutral.shape == (B,), "num_params must equal x.shape[0]"

    if normalize_neutral:
        neutral = neutral / N

    n2 = neutral.reshape(1, B)                     # (1, B): batch on lanes
    TB = _choose_batch_tile(B, N)
    grid = (pl.cdiv(B, TB),)

    kernel = functools.partial(
        _uninorm_kernel, tnorm=tnorm, off_diagonal=off_diagonal
    )

    out = pl.pallas_call(
        kernel,
        out_shape=jax.ShapeDtypeStruct((1, B), jnp.float32),
        grid=grid,
        in_specs=[
            pl.BlockSpec((TB, N), lambda i: (i, 0)),   # x batch tile, native layout
            pl.BlockSpec((1, TB), lambda i: (0, i)),   # neutral slice
        ],
        out_specs=pl.BlockSpec((1, TB), lambda i: (0, i)),
        scratch_shapes=[pltpu.VMEM((N, TB), jnp.float32)],
        compiler_params=pltpu.CompilerParams(dimension_semantics=("parallel",)),
    )(x, n2)

    # TODO(synk): activate_linear() (nn.Linear fc head) is not enabled by
    # default in the module; fc stays the identity here.
    return out[0]


# ----------------------------------------------------------------------------
# Pure-JAX reference (mirrors the PyTorch recursion / division formulas
# exactly), for checking.
# ----------------------------------------------------------------------------
def _uninorm_ref(x, neutral, tnorm="lukasiewicz", off_diagonal="min"):
    def tnorm_fn(u, v):
        if tnorm == "lukasiewicz":
            return jnp.maximum(0.0, u + v - 1.0)
        return u * v

    def tconorm_fn(u, v):
        if tnorm == "lukasiewicz":
            return jnp.minimum(1.0, u + v)
        return (u + v) - u * v

    def offdiag_fn(a, b):
        if off_diagonal == "min":
            return jnp.minimum(a, b)
        if off_diagonal == "mean":
            return (a + b) * 0.5
        return jnp.maximum(a, b)

    def min_uninorm(xp):  # (B, 2)
        a, b = xp[:, 0], xp[:, 1]
        m00 = (a <= neutral) & (b <= neutral)
        v00 = neutral * tnorm_fn(a / neutral, b / neutral)
        m11 = (a >= neutral) & (b >= neutral)
        om = 1.0 - neutral
        v11 = neutral + om * tconorm_fn((a - neutral) / om, (b - neutral) / om)
        mxx = ((a > neutral) & (b < neutral)) | ((a < neutral) & (b > neutral))
        vxx = offdiag_fn(a, b)
        y = jnp.where(m00, v00, 0.0)
        y = jnp.where(m11, v11, y)
        y = jnp.where(mxx, vxx, y)
        return y

    def uninorm(xc):
        N = xc.shape[1]
        if N == 1:
            return xc[:, 0]
        if N == 2:
            return min_uninorm(xc)
        half = N // 2
        return min_uninorm(
            jnp.stack([uninorm(xc[:, :half]), uninorm(xc[:, half:])], axis=1)
        )

    return uninorm(x)


if __name__ == "__main__":
    # num_params == batch size (neutral is indexed by the batch dimension in
    # the PyTorch module); aggregate `seq` values per row.  batch=128 keeps the
    # lane axis fully dense (one full vreg width) while staying tiny overall.
    batch = 128
    seq = 8

    key = jax.random.PRNGKey(0)
    kx, kn = jax.random.split(key)
    x = jax.random.uniform(kx, (batch, seq), dtype=jnp.float32)
    # Per-row neutral in (0.2, 0.8) exercises all three uninorm regions.
    neutral = jax.random.uniform(kn, (batch,), dtype=jnp.float32,
                                 minval=0.2, maxval=0.8)

    # 1) Default config: lukasiewicz t-norm, min off-diagonal.
    y = uninorm_aggregator_forward(
        x, neutral, tnorm="lukasiewicz", off_diagonal="min",
        normalize_neutral=False,
    )
    y = jax.block_until_ready(y)
    y_ref = _uninorm_ref(x, neutral)
    assert y.shape == (batch,)
    assert jnp.allclose(y, y_ref, atol=1e-5, rtol=1e-5), (y, y_ref)

    # 2) Constant neutral, as in __init__: ones(num_params) * init_neutral.
    neutral_c = jnp.full((batch,), 0.4, dtype=jnp.float32)
    y2 = jax.block_until_ready(uninorm_aggregator_forward(x, neutral_c))
    y2_ref = _uninorm_ref(x, neutral_c)
    assert jnp.allclose(y2, y2_ref, atol=1e-5, rtol=1e-5), (y2, y2_ref)

    # 3) Product t-norm, mean off-diagonal, normalize_neutral=True.
    y3 = jax.block_until_ready(
        uninorm_aggregator_forward(
            x, neutral, tnorm="product", off_diagonal="mean",
            normalize_neutral=True,
        )
    )
    y3_ref = _uninorm_ref(x, neutral / seq, tnorm="product", off_diagonal="mean")
    assert jnp.allclose(y3, y3_ref, atol=1e-5, rtol=1e-5), (y3, y3_ref)

    print("KERNEL_OK")
</pallas_src>

<mosaic_0001>
module attributes {stable_mosaic.version = 11 : i64} {
  func.func @_uninorm_kernel(%arg0: i32, %arg1: memref<128x8xf32, #tpu.memory_space<vmem>>, %arg2: memref<1x128xf32, #tpu.memory_space<vmem>>, %arg3: memref<1x128xf32, #tpu.memory_space<vmem>>, %arg4: memref<8x128xf32, #tpu.memory_space<vmem>>) attributes {dimension_semantics = [#tpu.dimension_semantics<parallel>], iteration_bounds = array<i64: 1>, scalar_prefetch = 0 : i64, scratch_operands = 1 : i64, tpu.core_type = #tpu.core_type<tc>, window_params = [{transform_indices = @transform_0, window_bounds = array<i64: 128, 8>}, {transform_indices = @transform_1, window_bounds = array<i64: 1, 128>}, {transform_indices = @transform_2, window_bounds = array<i64: 1, 128>}]} {
    %c0 = arith.constant 0 : index
    %c0_0 = arith.constant 0 : index
    %0 = vector.load %arg2[%c0, %c0_0] : memref<1x128xf32, #tpu.memory_space<vmem>>, vector<1x128xf32>
    %c0_1 = arith.constant 0 : index
    %c0_2 = arith.constant 0 : index
    %1 = vector.load %arg1[%c0_1, %c0_2] : memref<128x8xf32, #tpu.memory_space<vmem>>, vector<128x8xf32>
    %2 = tpu.transpose %1, [1, 0] : vector<128x8xf32> -> vector<8x128xf32>
    %c0_3 = arith.constant 0 : index
    %c0_4 = arith.constant 0 : index
    %3 = vector.load %arg4[%c0_3, %c0_4] : memref<8x128xf32, #tpu.memory_space<vmem>>, vector<8x128xf32>
    tpu.vector_store %arg4[%c0_3, %c0_4], %2 {strides = array<i32>} : memref<8x128xf32, #tpu.memory_space<vmem>>, vector<8x128xf32>,
    %c0_5 = arith.constant 0 : index
    %c0_6 = arith.constant 0 : index
    %4 = tpu.strided_load %arg4[%c0_5, %c0_6] {strides = array<i32: 2, 1>} : memref<8x128xf32, #tpu.memory_space<vmem>>, vector<4x128xf32>
    %c1 = arith.constant 1 : index
    %c0_7 = arith.constant 0 : index
    %5 = tpu.strided_load %arg4[%c1, %c0_7] {strides = array<i32: 2, 1>} : memref<8x128xf32, #tpu.memory_space<vmem>>, vector<4x128xf32>
    %6 = vector.broadcast %0 : vector<1x128xf32> to vector<4x128xf32>
    %7 = arith.cmpf ole, %4, %6 : vector<4x128xf32>
    %8 = vector.broadcast %0 : vector<1x128xf32> to vector<4x128xf32>
    %9 = arith.cmpf ole, %5, %8 : vector<4x128xf32>
    %10 = arith.andi %7, %9 : vector<4x128xi1>
    %11 = vector.broadcast %0 : vector<1x128xf32> to vector<4x128xf32>
    %12 = arith.cmpf oge, %4, %11 : vector<4x128xf32>
    %13 = vector.broadcast %0 : vector<1x128xf32> to vector<4x128xf32>
    %14 = arith.cmpf oge, %5, %13 : vector<4x128xf32>
    %15 = arith.andi %12, %14 : vector<4x128xi1>
    %16 = arith.addf %4, %5 : vector<4x128xf32>
    %17 = vector.broadcast %0 : vector<1x128xf32> to vector<4x128xf32>
    %18 = arith.subf %16, %17 : vector<4x128xf32>
    %cst = arith.constant 0.000000e+00 : f32
    %19 = vector.broadcast %cst : f32 to vector<4x128xf32>
    %20 = arith.maximumf %18, %19 : vector<4x128xf32>
    %cst_8 = arith.constant 1.000000e+00 : f32
    %21 = vector.broadcast %cst_8 : f32 to vector<4x128xf32>
    %22 = arith.minimumf %18, %21 : vector<4x128xf32>
    %23 = arith.minimumf %4, %5 : vector<4x128xf32>
    %24 = arith.select %10, %20, %23 : vector<4x128xi1>, vector<4x128xf32>
    %25 = arith.select %15, %22, %24 : vector<4x128xi1>, vector<4x128xf32>
    %c0_9 = arith.constant 0 : index
    %c0_10 = arith.constant 0 : index
    %26 = vector.load %arg4[%c0_9, %c0_10] : memref<8x128xf32, #tpu.memory_space<vmem>>, vector<4x128xf32>
    tpu.vector_store %arg4[%c0_9, %c0_10], %25 {strides = array<i32>} : memref<8x128xf32, #tpu.memory_space<vmem>>, vector<4x128xf32>,
    %c0_11 = arith.constant 0 : index
    %c0_12 = arith.constant 0 : index
    %27 = tpu.strided_load %arg4[%c0_11, %c0_12] {strides = array<i32: 2, 1>} : memref<8x128xf32, #tpu.memory_space<vmem>>, vector<2x128xf32>
    %c1_13 = arith.constant 1 : index
    %c0_14 = arith.constant 0 : index
    %28 = tpu.strided_load %arg4[%c1_13, %c0_14] {strides = array<i32: 2, 1>} : memref<8x128xf32, #tpu.memory_space<vmem>>, vector<2x128xf32>
    %29 = vector.broadcast %0 : vector<1x128xf32> to vector<2x128xf32>
    %30 = arith.cmpf ole, %27, %29 : vector<2x128xf32>
    %31 = vector.broadcast %0 : vector<1x128xf32> to vector<2x128xf32>
    %32 = arith.cmpf ole, %28, %31 : vector<2x128xf32>
    %33 = arith.andi %30, %32 : vector<2x128xi1>
    %34 = vector.broadcast %0 : vector<1x128xf32> to vector<2x128xf32>
    %35 = arith.cmpf oge, %27, %34 : vector<2x128xf32>
    %36 = vector.broadcast %0 : vector<1x128xf32> to vector<2x128xf32>
    %37 = arith.cmpf oge, %28, %36 : vector<2x128xf32>
    %38 = arith.andi %35, %37 : vector<2x128xi1>
    %39 = arith.addf %27, %28 : vector<2x128xf32>
    %40 = vector.broadcast %0 : vector<1x128xf32> to vector<2x128xf32>
    %41 = arith.subf %39, %40 : vector<2x128xf32>
    %cst_15 = arith.constant 0.000000e+00 : f32
    %42 = vector.broadcast %cst_15 : f32 to vector<2x128xf32>
    %43 = arith.maximumf %41, %42 : vector<2x128xf32>
    %cst_16 = arith.constant 1.000000e+00 : f32
    %44 = vector.broadcast %cst_16 : f32 to vector<2x128xf32>
    %45 = arith.minimumf %41, %44 : vector<2x128xf32>
    %46 = arith.minimumf %27, %28 : vector<2x128xf32>
    %47 = arith.select %33, %43, %46 : vector<2x128xi1>, vector<2x128xf32>
    %48 = arith.select %38, %45, %47 : vector<2x128xi1>, vector<2x128xf32>
    %c0_17 = arith.constant 0 : index
    %c0_18 = arith.constant 0 : index
    %49 = vector.load %arg4[%c0_17, %c0_18] : memref<8x128xf32, #tpu.memory_space<vmem>>, vector<2x128xf32>
    tpu.vector_store %arg4[%c0_17, %c0_18], %48 {strides = array<i32>} : memref<8x128xf32, #tpu.memory_space<vmem>>, vector<2x128xf32>,
    %c0_19 = arith.constant 0 : index
    %c0_20 = arith.constant 0 : index
    %50 = vector.load %arg4[%c0_19, %c0_20] : memref<8x128xf32, #tpu.memory_space<vmem>>, vector<1x128xf32>
    %c1_21 = arith.constant 1 : index
    %c0_22 = arith.constant 0 : index
    %51 = vector.load %arg4[%c1_21, %c0_22] : memref<8x128xf32, #tpu.memory_space<vmem>>, vector<1x128xf32>
    %52 = arith.cmpf ole, %50, %0 : vector<1x128xf32>
    %53 = arith.cmpf ole, %51, %0 : vector<1x128xf32>
    %54 = arith.andi %52, %53 : vector<1x128xi1>
    %55 = arith.cmpf oge, %50, %0 : vector<1x128xf32>
    %56 = arith.cmpf oge, %51, %0 : vector<1x128xf32>
    %57 = arith.andi %55, %56 : vector<1x128xi1>
    %58 = arith.addf %50, %51 : vector<1x128xf32>
    %59 = arith.subf %58, %0 : vector<1x128xf32>
    %cst_23 = arith.constant 0.000000e+00 : f32
    %60 = vector.broadcast %cst_23 : f32 to vector<1x128xf32>
    %61 = arith.maximumf %59, %60 : vector<1x128xf32>
    %cst_24 = arith.constant 1.000000e+00 : f32
    %62 = vector.broadcast %cst_24 : f32 to vector<1x128xf32>
    %63 = arith.minimumf %59, %62 : vector<1x128xf32>
    %64 = arith.minimumf %50, %51 : vector<1x128xf32>
    %65 = arith.select %54, %61, %64 : vector<1x128xi1>, vector<1x128xf32>
    %66 = arith.select %57, %63, %65 : vector<1x128xi1>, vector<1x128xf32>
    %c0_25 = arith.constant 0 : index
    %c0_26 = arith.constant 0 : index
    %67 = vector.load %arg3[%c0_25, %c0_26] : memref<1x128xf32, #tpu.memory_space<vmem>>, vector<1x128xf32>
    tpu.vector_store %arg3[%c0_25, %c0_26], %66 {strides = array<i32>} : memref<1x128xf32, #tpu.memory_space<vmem>>, vector<1x128xf32>,
    return
  }
  func.func @transform_0(%arg0: i32) -> (i32, i32) {
    %c0_i32 = arith.constant 0 : i32
    %c0_i32_0 = arith.constant 0 : i32
    return %arg0, %c0_i32 : i32, i32
  }
  func.func @transform_1(%arg0: i32) -> (i32, i32) {
    %c0_i32 = arith.constant 0 : i32
    %c0_i32_0 = arith.constant 0 : i32
    return %c0_i32, %arg0 : i32, i32
  }
  func.func @transform_2(%arg0: i32) -> (i32, i32) {
    %c0_i32 = arith.constant 0 : i32
    %c0_i32_0 = arith.constant 0 : i32
    return %c0_i32, %arg0 : i32, i32
  }
}

</mosaic_0001>

<bundles_post_ra>
// kernel: tpu_custom_call.1
= control target key start
LH: loop header
LB: loop body
LE: loop exit
PB: predicated region body
PF: predicated region fallthrough
CT: control target
= control target key end

     0   :  { %s231_s0 = inlined_call_operand.vmem [shape: f32[128,8], index: 0, kind: input, shape index: {}]   ;;  %s232_s1 = inlined_call_operand.vmem [shape: f32[1,128], index: 1, kind: input, shape index: {}]   ;;  %s233_s2 = inlined_call_operand.hbm [shape: f32[1,128], index: 2, kind: output, shape index: {}]  }
   0x1   :  { %v13_v0 = vld [vmem:[%s231_s0] sm:$0xff] }
   0x2   :  { %29 = vxpose.xlu0.b32.start [1/16] (narrow) %v13_v0, 8 }
   0x3   :  { %7 = vsyncpa [#allocation4], 0  ;;  %v14_v1 = vld [vmem:[%s231_s0 + $0x8] sm:$0xff]  ;;  %v15_v2 = vld [vmem:[%s231_s0 + $0x10] sm:$0xff]  ;;  %s158_s16 = smov [#allocation3]   ;;  %s121_s20 = sshll.u32 %s233_s2, 4  ;;  %s122_s20 = int_to_ptr.hbm [resolvable:$true] %s121_s20 }
   0x4   :  { %v16_v3 = vld [vmem:[%s231_s0 + $0x18] sm:$0xff]  ;;  %v17_v4 = vld [vmem:[%s231_s0 + $0x20] sm:$0xff]  ;;  %v18_v5 = vld [vmem:[%s231_s0 + $0x28] sm:$0xff]  ;;  %s119_s17 = sshll.u32 %s158_s16, 4  ;;  %s120_s17 = int_to_ptr.vmem [resolvable:$true] %s119_s17 }
   0x5   :  { %v19_v6 = vld [vmem:[%s231_s0 + $0x30] sm:$0xff]  ;;  %v20_v7 = vld [vmem:[%s231_s0 + $0x38] sm:$0xff]  ;;  %v21_v8 = vld [vmem:[%s231_s0 + $0x40] sm:$0xff] }
   0x6   :  { %v22_v9 = vld [vmem:[%s231_s0 + $0x48] sm:$0xff]  ;;  %v23_v10 = vld [vmem:[%s231_s0 + $0x50] sm:$0xff]  ;;  %v24_v11 = vld [vmem:[%s231_s0 + $0x58] sm:$0xff] }
   0x7   :  { %v25_v12 = vld [vmem:[%s231_s0 + $0x60] sm:$0xff]  ;;  %v26_v13 = vld [vmem:[%s231_s0 + $0x68] sm:$0xff]  ;;  %v27_v14 = vld [vmem:[%s231_s0 + $0x70] sm:$0xff] }
   0x8   :  { %v28_v15 = vld [vmem:[%s231_s0 + $0x78] sm:$0xff]  ;;  %v131_v17 = vld [vmem:[%s232_s1] ss:$0 sm:$0xff] }
   0x9   :  { %v12_v38 = vld [vmem:[%s232_s1] sm:$0x1] }
   0xa   :  { %30 = vxpose.xlu0.b32.cont [2/16] (narrow) %v14_v1, 8 }
  0x12   :  { %31 = vxpose.xlu0.b32.cont [3/16] (narrow) %v15_v2, 8 }
  0x1a   :  { %32 = vxpose.xlu0.b32.cont [4/16] (narrow) %v16_v3, 8 }
  0x22   :  { %33 = vxpose.xlu0.b32.cont [5/16] (narrow) %v17_v4, 8 }
  0x2a   :  { %34 = vxpose.xlu0.b32.cont [6/16] (narrow) %v18_v5, 8 }
  0x32   :  { %35 = vxpose.xlu0.b32.cont [7/16] (narrow) %v19_v6, 8 }
  0x3a   :  { %36 = vxpose.xlu0.b32.cont [8/16] (narrow) %v20_v7, 8 }
  0x42   :  { %37 = vxpose.xlu0.b32.cont [9/16] (narrow) %v21_v8, 8 }
  0x4a   :  { %38 = vxpose.xlu0.b32.cont [10/16] (narrow) %v22_v9, 8 }
  0x52   :  { %39 = vxpose.xlu0.b32.cont [11/16] (narrow) %v23_v10, 8 }
  0x5a   :  { %40 = vxpose.xlu0.b32.cont [12/16] (narrow) %v24_v11, 8 }
  0x62   :  { %41 = vxpose.xlu0.b32.cont [13/16] (narrow) %v25_v12, 8 }
  0x6a   :  { %42 = vxpose.xlu0.b32.cont [14/16] (narrow) %v26_v13, 8 }
  0x72   :  { %43 = vxpose.xlu0.b32.cont [15/16] (narrow) %v27_v14, 8 }
  0x7a   :  { %44 = vxpose.xlu0.b32.end [16/16] (narrow) %v28_v15, 8 }
  0xa6   :  { %v45_v16 = vpop.trf.xlu0 }
  0xa7   :  { %61 = vst [vmem:[#allocation2] sm:$0xff] %v45_v16 }
  0xae   :  { %v62_v18 = vld [vmem:[#allocation2] ss:$2 sm:$0xf]  ;;  %v64_v19 = vld [vmem:[#allocation2 + $0x1] ss:$2 sm:$0xf] }
  0xaf   :  { %v74_v20 = vadd.f32 %v64_v19, %v62_v18  ;;  %vm68_vm0 = vcmp.le.f32.partialorder %v62_v18, %v131_v17  ;;  %vm69_vm1 = vcmp.le.f32.partialorder %v64_v19, %v131_v17  ;;  %vm71_vm2 = vcmp.ge.f32.partialorder %v62_v18, %v131_v17 }
  0xb0   :  { %vm72_vm3 = vcmp.ge.f32.partialorder %v64_v19, %v131_v17  ;;  %v78_v24 = vmin.f32 %v62_v18, %v64_v19  ;;  %vm70_vm4 = vmand %vm68_vm0, %vm69_vm1 }
  0xb1   :  { %v75_v21 = vsub.f32 %v74_v20, %v131_v17  ;;  %vm73_vm5 = vmand %vm71_vm2, %vm72_vm3 }
  0xb3   :  { %v76_v22 = vmax.f32 %v75_v21, 0.0  ;;  %v77_v23 = vmin.f32 %v75_v21, 1.0 }
  0xb5   :  { %v79_v25 = vsel %vm70_vm4, %v76_v22, %v78_v24 }
  0xb6   :  { %v80_v26 = vsel %vm73_vm5, %v77_v23, %v79_v25 }
  0xb7   :  { %81 = vst [vmem:[#allocation2] sm:$0xf] %v80_v26 }
  0xbe   :  { %v82_v27 = vld [vmem:[#allocation2] ss:$2 sm:$0x3]  ;;  %v83_v28 = vld [vmem:[#allocation2 + $0x1] ss:$2 sm:$0x3] }
  0xbf   :  { %v90_v29 = vadd.f32 %v83_v28, %v82_v27  ;;  %vm84_vm6 = vcmp.le.f32.partialorder %v82_v27, %v131_v17  ;;  %vm85_vm7 = vcmp.le.f32.partialorder %v83_v28, %v131_v17  ;;  %vm87_vm8 = vcmp.ge.f32.partialorder %v82_v27, %v131_v17 }
  0xc0   :  { %vm88_vm9 = vcmp.ge.f32.partialorder %v83_v28, %v131_v17  ;;  %v94_v33 = vmin.f32 %v82_v27, %v83_v28  ;;  %vm86_vm10 = vmand %vm84_vm6, %vm85_vm7 }
  0xc1   :  { %v91_v30 = vsub.f32 %v90_v29, %v131_v17  ;;  %vm89_vm11 = vmand %vm87_vm8, %vm88_vm9 }
  0xc3   :  { %v92_v31 = vmax.f32 %v91_v30, 0.0  ;;  %v93_v32 = vmin.f32 %v91_v30, 1.0 }
  0xc5   :  { %v95_v34 = vsel %vm86_vm10, %v92_v31, %v94_v33 }
  0xc6   :  { %v96_v35 = vsel %vm89_vm11, %v93_v32, %v95_v34 }
  0xc7   :  { %97 = vst [vmem:[#allocation2] sm:$0x3] %v96_v35 }
  0xce   :  { %v98_v36 = vld [vmem:[#allocation2] sm:$0x1]  ;;  %v99_v37 = vld [vmem:[#allocation2 + $0x1] sm:$0x1] }
  0xcf   :  { %v106_v39 = vadd.f32 %v99_v37, %v98_v36  ;;  %vm100_vm12 = vcmp.le.f32.partialorder %v98_v36, %v12_v38  ;;  %vm101_vm13 = vcmp.le.f32.partialorder %v99_v37, %v12_v38  ;;  %vm103_vm14 = vcmp.ge.f32.partialorder %v98_v36, %v12_v38 }
  0xd0   :  { %vm104_vm15 = vcmp.ge.f32.partialorder %v99_v37, %v12_v38  ;;  %v110_v43 = vmin.f32 %v98_v36, %v99_v37  ;;  %vm102_vm0 = vmand %vm100_vm12, %vm101_vm13 }
  0xd1   :  { %v107_v40 = vsub.f32 %v106_v39, %v12_v38  ;;  %vm105_vm1 = vmand %vm103_vm14, %vm104_vm15 }
  0xd3   :  { %v108_v41 = vmax.f32 %v107_v40, 0.0  ;;  %v109_v42 = vmin.f32 %v107_v40, 1.0 }
  0xd5   :  { %v111_v44 = vsel %vm102_vm0, %v108_v41, %v110_v43 }
  0xd6   :  { %v112_v45 = vsel %vm105_vm1, %v109_v42, %v111_v44 }
  0xd7   :  { %113 = vst [vmem:[#allocation3] sm:$0x1] %v112_v45 }
  0xd8   :  { %124 = dma.vmem_to_hbm [thread:$0]  %s120_s17, 16, %s122_s20, [#allocation4]  }
  0xd9   :  { %156 = dma.done.wait [#allocation4], 16  }
  0xda   :  { %157 = vsyncadd [#allocation4], 4294967280 }
  0xdb   :  { %129 = vsyncpa [#allocation4], 1 }

</bundles_post_ra>
